<compile_context>
chip_gen: v5e
topology: v5e:2x2
jax: 0.10.0
libtpu: 0.0.40
codegen_flags: <defaults>
</compile_context>

<pallas_src>
import jax
import jax.numpy as jnp
from jax.experimental import pallas as pl
from jax.experimental.pallas import tpu as pltpu

_LANE = 128
_MAX_TM = 2048
_MIN_GRID_STEPS = 8                      # target grid depth for megacore / DMA overlap
_BUFFERED = getattr(pl, "Buffered", None)


def _round_up(x, m):
    return ((x + m - 1) // m) * m


def _cdiv(a, b):
    return -(-a // b)


def _maybe_pad_dim(d):
    """Pad a feature dim to a 128-lane multiple only when inflation is <1.25x."""
    d_p = _round_up(d, _LANE)
    return d_p if d_p <= int(d * 1.25) else d


def _pad2(a, rows, cols):
    pr, pc = rows - a.shape[0], cols - a.shape[1]
    if pr == 0 and pc == 0:
        return a
    return jnp.pad(a, ((0, pr), (0, pc)))


def _vmem_limits():
    """(vmem_limit_bytes, tiling_budget_bytes), generation-aware."""
    try:
        cap = int(pltpu.get_tpu_info().vmem_capacity_bytes)
    except Exception:
        cap = 64 * 1024 * 1024                       # conservative (v7x-sized)
    # ~75% of physical VMEM, capped at 96 MiB: v7x -> 48 MiB, v5e/v6e -> 96 MiB.
    limit = min((cap * 3) // 4, 96 * 1024 * 1024)
    limit = max(limit, 32 * 1024 * 1024)
    budget = limit - (4 << 20)                       # headroom for internal scratch
    return limit, budget


# ---------------------------------------------------------------------------
# Kernels
# ---------------------------------------------------------------------------
def _make_mlp_kernel(precision):
    """Fused fc1 -> relu -> fc2 -> relu -> fc3 over one row tile."""
    def kernel(x_ref, w1_ref, b1_ref, w2_ref, b2_ref, w3_ref, b3_ref, o_ref):
        f32 = jnp.float32
        # Hoist bias loads/casts once per invocation (JAX does not CSE
        # broadcast_in_dim if the body is ever wrapped in a loop).
        b1 = b1_ref[...].astype(f32)
        b2 = b2_ref[...].astype(f32)
        b3 = b3_ref[...].astype(f32)
        h = jnp.dot(x_ref[...], w1_ref[...],
                    preferred_element_type=f32, precision=precision)
        h = jnp.maximum(h + b1, 0.0)
        h = jnp.dot(h.astype(w2_ref.dtype), w2_ref[...],
                    preferred_element_type=f32, precision=precision)
        h = jnp.maximum(h + b2, 0.0)
        y = jnp.dot(h.astype(w3_ref.dtype), w3_ref[...],
                    preferred_element_type=f32, precision=precision)
        # Dropout(resid_pdrop=0.0) in the reference module is the identity.
        o_ref[...] = (y + b3).astype(o_ref.dtype)
    return kernel


def _make_linear_kernel(apply_relu, precision):
    """One (row-tile, out-feature-tile) block of y = act(x @ w + b)."""
    def kernel(x_ref, w_ref, b_ref, o_ref):
        acc = jnp.dot(x_ref[...], w_ref[...],
                      preferred_element_type=jnp.float32, precision=precision)
        acc = acc + b_ref[...].astype(jnp.float32)
        if apply_relu:
            acc = jnp.maximum(acc, 0.0)
        o_ref[...] = acc.astype(o_ref.dtype)
    return kernel


# ---------------------------------------------------------------------------
# Fallback: per-layer GEMM with blocked output features (used when the three
# weight matrices cannot stay VMEM-resident).  Full-K blocks (legal even for
# non-128 dims) avoid a reduction grid axis.
# ---------------------------------------------------------------------------
def _linear(x2, w, b, *, apply_relu, precision, vmem_limit, vmem_budget):
    m, k = x2.shape
    n = w.shape[1]
    dtype = x2.dtype
    itemsize = jnp.dtype(dtype).itemsize
    sublane = max(8, 32 // itemsize)

    if n > 512:
        tn = 512
        # Shrink the column tile (multiples of 128) if the full-K weight tile
        # would dominate the VMEM budget.
        while tn > _LANE and 2 * (k * tn + tn) * itemsize > vmem_budget // 2:
            tn //= 2
    else:
        tn = n                                        # full array dim is legal
    # TODO(synk): for k so large that even a (k, 128) f32 tile blows VMEM, a
    # K-reduction grid axis with an accumulator would be needed.

    w_tile_bytes = 2 * (k * tn + tn) * itemsize       # double-buffered w/b tiles
    per_row = 2 * (k + tn) * itemsize + tn * 4        # x/out streams + f32 acc
    tm_cap = (max(vmem_budget - w_tile_bytes, 0) // per_row) // sublane * sublane
    tm_depth = _round_up(_cdiv(m, _MIN_GRID_STEPS), sublane)
    tm = max(sublane, min(max(tm_cap, sublane), tm_depth, _MAX_TM))
    grid = (_cdiv(m, tm), _cdiv(n, tn))

    return pl.pallas_call(
        _make_linear_kernel(apply_relu, precision),
        out_shape=jax.ShapeDtypeStruct((m, n), dtype),
        grid=grid,
        in_specs=[
            pl.BlockSpec((tm, k), lambda i, j: (i, 0)),
            pl.BlockSpec((k, tn), lambda i, j: (0, j)),
            pl.BlockSpec((1, tn), lambda i, j: (0, j)),
        ],
        out_specs=pl.BlockSpec((tm, tn), lambda i, j: (i, j)),
        compiler_params=pltpu.CompilerParams(
            dimension_semantics=("parallel", "parallel"),
            vmem_limit_bytes=vmem_limit),
    )(x2, w, b)


# ---------------------------------------------------------------------------
# Public forward
# ---------------------------------------------------------------------------
def non_periodic_forward(x, params, *, compute_dtype=None, precision=None):
    """NonPeriodic MLP: (..., input_len) -> (..., output_len).

    params = (w1, b1, w2, b2, w3, b3); weights stored pre-transposed as
    (in_features, out_features), biases as (1, out_features).
    """
    w1, b1, w2, b2, w3, b3 = params
    d_in, d_out = w1.shape[0], w3.shape[1]
    assert x.shape[-1] == d_in
    lead = x.shape[:-1]
    x2 = x.reshape(-1, d_in)
    m = x2.shape[0]

    # Optional bf16 MXU path; default keeps caller dtype with full-f32 MXU
    # passes (precision=HIGHEST) for parity with the f32 Linear reference.
    if compute_dtype is not None:
        x2 = x2.astype(compute_dtype)
        w1, b1, w2, b2, w3, b3 = (a.astype(compute_dtype)
                                  for a in (w1, b1, w2, b2, w3, b3))
    dtype = x2.dtype
    if precision is None:
        precision = (jax.lax.Precision.HIGHEST if dtype == jnp.float32
                     else jax.lax.Precision.DEFAULT)
    itemsize = jnp.dtype(dtype).itemsize
    sublane = max(8, 32 // itemsize)

    vmem_limit, vmem_budget = _vmem_limits()

    # Lane-pad feature dims only when cheap; otherwise keep true dims and
    # skip the wrapper-side pad/slice HBM copies entirely.
    d_in_e, d_out_e = _maybe_pad_dim(d_in), _maybe_pad_dim(d_out)
    x2 = _pad2(x2, m, d_in_e)
    w1, b1 = _pad2(w1, d_in_e, d_in_e), _pad2(b1, 1, d_in_e)
    w2, b2 = _pad2(w2, d_in_e, d_in_e), _pad2(b2, 1, d_in_e)
    w3, b3 = _pad2(w3, d_in_e, d_out_e), _pad2(b3, 1, d_out_e)

    weight_bytes = (2 * d_in_e * d_in_e + d_in_e * d_out_e
                    + 2 * d_in_e + d_out_e) * itemsize
    # Double-buffered x/out streams + f32 intermediates the fused body
    # materializes (h after fc1, h after fc2, cast copy fed to next matmul).
    per_row = 2 * (d_in_e + d_out_e) * itemsize + 3 * d_in_e * 4

    def _try_fused(use_buffered):
        buf_w = 1 if use_buffered else 2
        avail = vmem_budget - buf_w * weight_bytes
        tm_cap = (max(avail, 0) // per_row) // sublane * sublane
        if tm_cap < min(64, _round_up(m, sublane)):
            raise ValueError("resident-weight MLP does not fit the VMEM budget")
        # Keep the grid >= _MIN_GRID_STEPS deep when rows allow so the row
        # axis feeds both v7x TensorCores and the DMA pipeline.
        tm_depth = _round_up(_cdiv(m, _MIN_GRID_STEPS), sublane)
        tm = max(sublane, min(tm_cap, tm_depth, _MAX_TM))
        grid = (_cdiv(m, tm),)

        def resident(shape):
            if use_buffered:
                return pl.BlockSpec(shape, lambda i: (0, 0),
                                    pipeline_mode=_BUFFERED(1))
            return pl.BlockSpec(shape, lambda i: (0, 0))

        cost = pl.CostEstimate(
            flops=2 * m * (2 * d_in_e * d_in_e + d_in_e * d_out_e),
            transcendentals=0,
            bytes_accessed=m * (d_in_e + d_out_e) * itemsize + weight_bytes)

        return pl.pallas_call(
            _make_mlp_kernel(precision),
            out_shape=jax.ShapeDtypeStruct((m, d_out_e), dtype),
            grid=grid,
            in_specs=[
                pl.BlockSpec((tm, d_in_e), lambda i: (i, 0)),
                resident(w1.shape), resident(b1.shape),
                resident(w2.shape), resident(b2.shape),
                resident(w3.shape), resident(b3.shape),
            ],
            out_specs=pl.BlockSpec((tm, d_out_e), lambda i: (i, 0)),
            compiler_params=pltpu.CompilerParams(
                dimension_semantics=("parallel",),
                vmem_limit_bytes=vmem_limit),
            cost_estimate=cost,
        )(x2, w1, b1, w2, b2, w3, b3)

    out = None
    attempts = [True, False] if _BUFFERED is not None else [False]
    for use_buffered in attempts:
        try:
            out = _try_fused(use_buffered)
            break
        except Exception:
            continue
    if out is None:
        # Weights too large to keep resident: block the output-feature dim of
        # each layer instead of collapsing the row tile (avoids the per-step
        # overhead cliff and vmem_limit failures, hit earliest on v7x).
        h = _linear(x2, w1, b1, apply_relu=True, precision=precision,
                    vmem_limit=vmem_limit, vmem_budget=vmem_budget)
        h = _linear(h, w2, b2, apply_relu=True, precision=precision,
                    vmem_limit=vmem_limit, vmem_budget=vmem_budget)
        out = _linear(h, w3, b3, apply_relu=False, precision=precision,
                      vmem_limit=vmem_limit, vmem_budget=vmem_budget)

    if d_out_e != d_out:
        out = out[:, :d_out]
    return out.reshape(*lead, d_out)


# ---------------------------------------------------------------------------
# Synthetic params + pure-JAX reference
# ---------------------------------------------------------------------------
def init_params(key, input_len, output_len, dtype=jnp.float32):
    """Deterministic synthetic init (shapes match the PyTorch module)."""
    k1, k2, k3, k4, k5, k6 = jax.random.split(key, 6)
    scale = 0.02
    w1 = (jax.random.normal(k1, (input_len, input_len)) * scale).astype(dtype)
    b1 = (jax.random.normal(k2, (1, input_len)) * scale).astype(dtype)
    w2 = (jax.random.normal(k3, (input_len, input_len)) * scale).astype(dtype)
    b2 = (jax.random.normal(k4, (1, input_len)) * scale).astype(dtype)
    w3 = (jax.random.normal(k5, (input_len, output_len)) * scale).astype(dtype)
    b3 = (jax.random.normal(k6, (1, output_len)) * scale).astype(dtype)
    return w1, b1, w2, b2, w3, b3


def _reference(x, params):
    w1, b1, w2, b2, w3, b3 = params
    hi = jax.lax.Precision.HIGHEST
    h = jnp.maximum(jnp.matmul(x, w1, precision=hi) + b1[0], 0.0)
    h = jnp.maximum(jnp.matmul(h, w2, precision=hi) + b2[0], 0.0)
    return jnp.matmul(h, w3, precision=hi) + b3[0]


if __name__ == "__main__":
    key = jax.random.PRNGKey(0)
    batch, channels = 2, 4
    input_len, output_len = 32, 16

    kx, kp = jax.random.split(key)
    x = jax.random.normal(kx, (batch, channels, input_len), dtype=jnp.float32)
    params = init_params(kp, input_len, output_len)

    out = non_periodic_forward(x, params)
    out = jax.block_until_ready(out)

    ref = _reference(x, params)
    assert out.shape == (batch, channels, output_len), out.shape
    assert jnp.allclose(out, ref, atol=1e-4, rtol=1e-4), "mismatch vs reference"

    print("KERNEL_OK")
</pallas_src>

<mosaic_0001>
module attributes {stable_mosaic.version = 11 : i64} {
  func.func @kernel(%arg0: i32, %arg1: memref<8x32xf32, #tpu.memory_space<vmem>>, %arg2: memref<32x32xf32, #tpu.memory_space<vmem>>, %arg3: memref<1x32xf32, #tpu.memory_space<vmem>>, %arg4: memref<32x32xf32, #tpu.memory_space<vmem>>, %arg5: memref<1x32xf32, #tpu.memory_space<vmem>>, %arg6: memref<32x16xf32, #tpu.memory_space<vmem>>, %arg7: memref<1x16xf32, #tpu.memory_space<vmem>>, %arg8: memref<8x16xf32, #tpu.memory_space<vmem>>) attributes {dimension_semantics = [#tpu.dimension_semantics<parallel>], iteration_bounds = array<i64: 1>, scalar_prefetch = 0 : i64, scratch_operands = 0 : i64, tpu.core_type = #tpu.core_type<tc>, window_params = [{transform_indices = @transform_0, window_bounds = array<i64: 8, 32>}, {pipeline_mode = #tpu.pipeline_mode<synchronous>, transform_indices = @transform_1, window_bounds = array<i64: 32, 32>}, {pipeline_mode = #tpu.pipeline_mode<synchronous>, transform_indices = @transform_2, window_bounds = array<i64: 1, 32>}, {pipeline_mode = #tpu.pipeline_mode<synchronous>, transform_indices = @transform_3, window_bounds = array<i64: 32, 32>}, {pipeline_mode = #tpu.pipeline_mode<synchronous>, transform_indices = @transform_4, window_bounds = array<i64: 1, 32>}, {pipeline_mode = #tpu.pipeline_mode<synchronous>, transform_indices = @transform_5, window_bounds = array<i64: 32, 16>}, {pipeline_mode = #tpu.pipeline_mode<synchronous>, transform_indices = @transform_6, window_bounds = array<i64: 1, 16>}, {transform_indices = @transform_7, window_bounds = array<i64: 8, 16>}]} {
    %c0 = arith.constant 0 : index
    %c0_0 = arith.constant 0 : index
    %0 = vector.load %arg3[%c0, %c0_0] : memref<1x32xf32, #tpu.memory_space<vmem>>, vector<1x32xf32>
    %c0_1 = arith.constant 0 : index
    %c0_2 = arith.constant 0 : index
    %1 = vector.load %arg5[%c0_1, %c0_2] : memref<1x32xf32, #tpu.memory_space<vmem>>, vector<1x32xf32>
    %c0_3 = arith.constant 0 : index
    %c0_4 = arith.constant 0 : index
    %2 = vector.load %arg7[%c0_3, %c0_4] : memref<1x16xf32, #tpu.memory_space<vmem>>, vector<1x16xf32>
    %c0_5 = arith.constant 0 : index
    %c0_6 = arith.constant 0 : index
    %3 = vector.load %arg1[%c0_5, %c0_6] : memref<8x32xf32, #tpu.memory_space<vmem>>, vector<8x32xf32>
    %c0_7 = arith.constant 0 : index
    %c0_8 = arith.constant 0 : index
    %4 = vector.load %arg2[%c0_7, %c0_8] : memref<32x32xf32, #tpu.memory_space<vmem>>, vector<32x32xf32>
    %cst = arith.constant dense<0.000000e+00> : vector<8x32xf32>
    %5 = tpu.matmul %3, %4, %cst {dimension_numbers = #tpu.dot_dimension_numbers<[1], [0], [0], [1], [0, 0, 1, 1], [], []>, precision = #tpu.contract_precision<fp32>} : vector<8x32xf32>, vector<32x32xf32>, vector<8x32xf32> -> vector<8x32xf32>
    %6 = vector.broadcast %0 : vector<1x32xf32> to vector<8x32xf32>
    %7 = arith.addf %5, %6 : vector<8x32xf32>
    %cst_9 = arith.constant 0.000000e+00 : f32
    %8 = vector.broadcast %cst_9 : f32 to vector<8x32xf32>
    %9 = arith.maximumf %7, %8 : vector<8x32xf32>
    %c0_10 = arith.constant 0 : index
    %c0_11 = arith.constant 0 : index
    %10 = vector.load %arg4[%c0_10, %c0_11] : memref<32x32xf32, #tpu.memory_space<vmem>>, vector<32x32xf32>
    %cst_12 = arith.constant dense<0.000000e+00> : vector<8x32xf32>
    %11 = tpu.matmul %9, %10, %cst_12 {dimension_numbers = #tpu.dot_dimension_numbers<[1], [0], [0], [1], [0, 0, 1, 1], [], []>, precision = #tpu.contract_precision<fp32>} : vector<8x32xf32>, vector<32x32xf32>, vector<8x32xf32> -> vector<8x32xf32>
    %12 = vector.broadcast %1 : vector<1x32xf32> to vector<8x32xf32>
    %13 = arith.addf %11, %12 : vector<8x32xf32>
    %cst_13 = arith.constant 0.000000e+00 : f32
    %14 = vector.broadcast %cst_13 : f32 to vector<8x32xf32>
    %15 = arith.maximumf %13, %14 : vector<8x32xf32>
    %c0_14 = arith.constant 0 : index
    %c0_15 = arith.constant 0 : index
    %16 = vector.load %arg6[%c0_14, %c0_15] : memref<32x16xf32, #tpu.memory_space<vmem>>, vector<32x16xf32>
    %cst_16 = arith.constant dense<0.000000e+00> : vector<8x16xf32>
    %17 = tpu.matmul %15, %16, %cst_16 {dimension_numbers = #tpu.dot_dimension_numbers<[1], [0], [0], [1], [0, 0, 1, 1], [], []>, precision = #tpu.contract_precision<fp32>} : vector<8x32xf32>, vector<32x16xf32>, vector<8x16xf32> -> vector<8x16xf32>
    %18 = vector.broadcast %2 : vector<1x16xf32> to vector<8x16xf32>
    %19 = arith.addf %17, %18 : vector<8x16xf32>
    %c0_17 = arith.constant 0 : index
    %c0_18 = arith.constant 0 : index
    %20 = vector.load %arg8[%c0_17, %c0_18] : memref<8x16xf32, #tpu.memory_space<vmem>>, vector<8x16xf32>
    tpu.vector_store %arg8[%c0_17, %c0_18], %19 {strides = array<i32>} : memref<8x16xf32, #tpu.memory_space<vmem>>, vector<8x16xf32>,
    return
  }
  func.func @transform_0(%arg0: i32) -> (i32, i32) {
    %c0_i32 = arith.constant 0 : i32
    %c0_i32_0 = arith.constant 0 : i32
    return %arg0, %c0_i32 : i32, i32
  }
  func.func @transform_1(%arg0: i32) -> (i32, i32) {
    %c0_i32 = arith.constant 0 : i32
    %c0_i32_0 = arith.constant 0 : i32
    %c0_i32_1 = arith.constant 0 : i32
    return %c0_i32, %c0_i32_0 : i32, i32
  }
  func.func @transform_2(%arg0: i32) -> (i32, i32) {
    %c0_i32 = arith.constant 0 : i32
    %c0_i32_0 = arith.constant 0 : i32
    %c0_i32_1 = arith.constant 0 : i32
    return %c0_i32, %c0_i32_0 : i32, i32
  }
  func.func @transform_3(%arg0: i32) -> (i32, i32) {
    %c0_i32 = arith.constant 0 : i32
    %c0_i32_0 = arith.constant 0 : i32
    %c0_i32_1 = arith.constant 0 : i32
    return %c0_i32, %c0_i32_0 : i32, i32
  }
  func.func @transform_4(%arg0: i32) -> (i32, i32) {
    %c0_i32 = arith.constant 0 : i32
    %c0_i32_0 = arith.constant 0 : i32
    %c0_i32_1 = arith.constant 0 : i32
    return %c0_i32, %c0_i32_0 : i32, i32
  }
  func.func @transform_5(%arg0: i32) -> (i32, i32) {
    %c0_i32 = arith.constant 0 : i32
    %c0_i32_0 = arith.constant 0 : i32
    %c0_i32_1 = arith.constant 0 : i32
    return %c0_i32, %c0_i32_0 : i32, i32
  }
  func.func @transform_6(%arg0: i32) -> (i32, i32) {
    %c0_i32 = arith.constant 0 : i32
    %c0_i32_0 = arith.constant 0 : i32
    %c0_i32_1 = arith.constant 0 : i32
    return %c0_i32, %c0_i32_0 : i32, i32
  }
  func.func @transform_7(%arg0: i32) -> (i32, i32) {
    %c0_i32 = arith.constant 0 : i32
    %c0_i32_0 = arith.constant 0 : i32
    return %arg0, %c0_i32 : i32, i32
  }
}

module attributes {stable_mosaic.version = 11 : i64} {
  func.func @kernel(%arg0: i32, %arg1: memref<8x32xf32, #tpu.memory_space<vmem>>, %arg2: memref<32x32xf32, #tpu.memory_space<vmem>>, %arg3: memref<1x32xf32, #tpu.memory_space<vmem>>, %arg4: memref<32x32xf32, #tpu.memory_space<vmem>>, %arg5: memref<1x32xf32, #tpu.memory_space<vmem>>, %arg6: memref<32x16xf32, #tpu.memory_space<vmem>>, %arg7: memref<1x16xf32, #tpu.memory_space<vmem>>, %arg8: memref<8x16xf32, #tpu.memory_space<vmem>>) attributes {dimension_semantics = [#tpu.dimension_semantics<parallel>], iteration_bounds = array<i64: 1>, scalar_prefetch = 0 : i64, scratch_operands = 0 : i64, tpu.core_type = #tpu.core_type<tc>, window_params = [{transform_indices = @transform_0, window_bounds = array<i64: 8, 32>}, {pipeline_mode = #tpu.pipeline_mode<synchronous>, transform_indices = @transform_1, window_bounds = array<i64: 32, 32>}, {pipeline_mode = #tpu.pipeline_mode<synchronous>, transform_indices = @transform_2, window_bounds = array<i64: 1, 32>}, {pipeline_mode = #tpu.pipeline_mode<synchronous>, transform_indices = @transform_3, window_bounds = array<i64: 32, 32>}, {pipeline_mode = #tpu.pipeline_mode<synchronous>, transform_indices = @transform_4, window_bounds = array<i64: 1, 32>}, {pipeline_mode = #tpu.pipeline_mode<synchronous>, transform_indices = @transform_5, window_bounds = array<i64: 32, 16>}, {pipeline_mode = #tpu.pipeline_mode<synchronous>, transform_indices = @transform_6, window_bounds = array<i64: 1, 16>}, {transform_indices = @transform_7, window_bounds = array<i64: 8, 16>}]} {
    %c0 = arith.constant 0 : index
    %c0_0 = arith.constant 0 : index
    %0 = vector.load %arg3[%c0, %c0_0] : memref<1x32xf32, #tpu.memory_space<vmem>>, vector<1x32xf32>
    %c0_1 = arith.constant 0 : index
    %c0_2 = arith.constant 0 : index
    %1 = vector.load %arg5[%c0_1, %c0_2] : memref<1x32xf32, #tpu.memory_space<vmem>>, vector<1x32xf32>
    %c0_3 = arith.constant 0 : index
    %c0_4 = arith.constant 0 : index
    %2 = vector.load %arg7[%c0_3, %c0_4] : memref<1x16xf32, #tpu.memory_space<vmem>>, vector<1x16xf32>
    %c0_5 = arith.constant 0 : index
    %c0_6 = arith.constant 0 : index
    %3 = vector.load %arg1[%c0_5, %c0_6] : memref<8x32xf32, #tpu.memory_space<vmem>>, vector<8x32xf32>
    %c0_7 = arith.constant 0 : index
    %c0_8 = arith.constant 0 : index
    %4 = vector.load %arg2[%c0_7, %c0_8] : memref<32x32xf32, #tpu.memory_space<vmem>>, vector<32x32xf32>
    %cst = arith.constant dense<0.000000e+00> : vector<8x32xf32>
    %5 = tpu.matmul %3, %4, %cst {dimension_numbers = #tpu.dot_dimension_numbers<[1], [0], [0], [1], [0, 0, 1, 1], [], []>, precision = #tpu.contract_precision<fp32>} : vector<8x32xf32>, vector<32x32xf32>, vector<8x32xf32> -> vector<8x32xf32>
    %6 = vector.broadcast %0 : vector<1x32xf32> to vector<8x32xf32>
    %7 = arith.addf %5, %6 : vector<8x32xf32>
    %cst_9 = arith.constant 0.000000e+00 : f32
    %8 = vector.broadcast %cst_9 : f32 to vector<8x32xf32>
    %9 = arith.maximumf %7, %8 : vector<8x32xf32>
    %c0_10 = arith.constant 0 : index
    %c0_11 = arith.constant 0 : index
    %10 = vector.load %arg4[%c0_10, %c0_11] : memref<32x32xf32, #tpu.memory_space<vmem>>, vector<32x32xf32>
    %cst_12 = arith.constant dense<0.000000e+00> : vector<8x32xf32>
    %11 = tpu.matmul %9, %10, %cst_12 {dimension_numbers = #tpu.dot_dimension_numbers<[1], [0], [0], [1], [0, 0, 1, 1], [], []>, precision = #tpu.contract_precision<fp32>} : vector<8x32xf32>, vector<32x32xf32>, vector<8x32xf32> -> vector<8x32xf32>
    %12 = vector.broadcast %1 : vector<1x32xf32> to vector<8x32xf32>
    %13 = arith.addf %11, %12 : vector<8x32xf32>
    %cst_13 = arith.constant 0.000000e+00 : f32
    %14 = vector.broadcast %cst_13 : f32 to vector<8x32xf32>
    %15 = arith.maximumf %13, %14 : vector<8x32xf32>
    %c0_14 = arith.constant 0 : index
    %c0_15 = arith.constant 0 : index
    %16 = vector.load %arg6[%c0_14, %c0_15] : memref<32x16xf32, #tpu.memory_space<vmem>>, vector<32x16xf32>
    %cst_16 = arith.constant dense<0.000000e+00> : vector<8x16xf32>
    %17 = tpu.matmul %15, %16, %cst_16 {dimension_numbers = #tpu.dot_dimension_numbers<[1], [0], [0], [1], [0, 0, 1, 1], [], []>, precision = #tpu.contract_precision<fp32>} : vector<8x32xf32>, vector<32x16xf32>, vector<8x16xf32> -> vector<8x16xf32>
    %18 = vector.broadcast %2 : vector<1x16xf32> to vector<8x16xf32>
    %19 = arith.addf %17, %18 : vector<8x16xf32>
    %c0_17 = arith.constant 0 : index
    %c0_18 = arith.constant 0 : index
    %20 = vector.load %arg8[%c0_17, %c0_18] : memref<8x16xf32, #tpu.memory_space<vmem>>, vector<8x16xf32>
    tpu.vector_store %arg8[%c0_17, %c0_18], %19 {strides = array<i32>} : memref<8x16xf32, #tpu.memory_space<vmem>>, vector<8x16xf32>,
    return
  }
  func.func @transform_0(%arg0: i32) -> (i32, i32) {
    %c0_i32 = arith.constant 0 : i32
    %c0_i32_0 = arith.constant 0 : i32
    return %arg0, %c0_i32 : i32, i32
  }
  func.func @transform_1(%arg0: i32) -> (i32, i32) {
    %c0_i32 = arith.constant 0 : i32
    %c0_i32_0 = arith.constant 0 : i32
    %c0_i32_1 = arith.constant 0 : i32
    return %c0_i32, %c0_i32_0 : i32, i32
  }
  func.func @transform_2(%arg0: i32) -> (i32, i32) {
    %c0_i32 = arith.constant 0 : i32
    %c0_i32_0 = arith.constant 0 : i32
    %c0_i32_1 = arith.constant 0 : i32
    return %c0_i32, %c0_i32_0 : i32, i32
  }
  func.func @transform_3(%arg0: i32) -> (i32, i32) {
    %c0_i32 = arith.constant 0 : i32
    %c0_i32_0 = arith.constant 0 : i32
    %c0_i32_1 = arith.constant 0 : i32
    return %c0_i32, %c0_i32_0 : i32, i32
  }
  func.func @transform_4(%arg0: i32) -> (i32, i32) {
    %c0_i32 = arith.constant 0 : i32
    %c0_i32_0 = arith.constant 0 : i32
    %c0_i32_1 = arith.constant 0 : i32
    return %c0_i32, %c0_i32_0 : i32, i32
  }
  func.func @transform_5(%arg0: i32) -> (i32, i32) {
    %c0_i32 = arith.constant 0 : i32
    %c0_i32_0 = arith.constant 0 : i32
    %c0_i32_1 = arith.constant 0 : i32
    return %c0_i32, %c0_i32_0 : i32, i32
  }
  func.func @transform_6(%arg0: i32) -> (i32, i32) {
    %c0_i32 = arith.constant 0 : i32
    %c0_i32_0 = arith.constant 0 : i32
    %c0_i32_1 = arith.constant 0 : i32
    return %c0_i32, %c0_i32_0 : i32, i32
  }
  func.func @transform_7(%arg0: i32) -> (i32, i32) {
    %c0_i32 = arith.constant 0 : i32
    %c0_i32_0 = arith.constant 0 : i32
    return %arg0, %c0_i32 : i32, i32
  }
}

module attributes {stable_mosaic.version = 11 : i64} {
  func.func @kernel(%arg0: i32, %arg1: i32, %arg2: memref<8x32xf32, #tpu.memory_space<vmem>>, %arg3: memref<32x32xf32, #tpu.memory_space<vmem>>, %arg4: memref<1x32xf32, #tpu.memory_space<vmem>>, %arg5: memref<8x32xf32, #tpu.memory_space<vmem>>) attributes {dimension_semantics = [#tpu.dimension_semantics<parallel>, #tpu.dimension_semantics<parallel>], iteration_bounds = array<i64: 1, 1>, scalar_prefetch = 0 : i64, scratch_operands = 0 : i64, tpu.core_type = #tpu.core_type<tc>, window_params = [{transform_indices = @transform_0, window_bounds = array<i64: 8, 32>}, {transform_indices = @transform_1, window_bounds = array<i64: 32, 32>}, {transform_indices = @transform_2, window_bounds = array<i64: 1, 32>}, {transform_indices = @transform_3, window_bounds = array<i64: 8, 32>}]} {
    %c0 = arith.constant 0 : index
    %c0_0 = arith.constant 0 : index
    %0 = vector.load %arg2[%c0, %c0_0] : memref<8x32xf32, #tpu.memory_space<vmem>>, vector<8x32xf32>
    %c0_1 = arith.constant 0 : index
    %c0_2 = arith.constant 0 : index
    %1 = vector.load %arg3[%c0_1, %c0_2] : memref<32x32xf32, #tpu.memory_space<vmem>>, vector<32x32xf32>
    %cst = arith.constant dense<0.000000e+00> : vector<8x32xf32>
    %2 = tpu.matmul %0, %1, %cst {dimension_numbers = #tpu.dot_dimension_numbers<[1], [0], [0], [1], [0, 0, 1, 1], [], []>, precision = #tpu.contract_precision<fp32>} : vector<8x32xf32>, vector<32x32xf32>, vector<8x32xf32> -> vector<8x32xf32>
    %c0_3 = arith.constant 0 : index
    %c0_4 = arith.constant 0 : index
    %3 = vector.load %arg4[%c0_3, %c0_4] : memref<1x32xf32, #tpu.memory_space<vmem>>, vector<1x32xf32>
    %4 = vector.broadcast %3 : vector<1x32xf32> to vector<8x32xf32>
    %5 = arith.addf %2, %4 : vector<8x32xf32>
    %cst_5 = arith.constant 0.000000e+00 : f32
    %6 = vector.broadcast %cst_5 : f32 to vector<8x32xf32>
    %7 = arith.maximumf %5, %6 : vector<8x32xf32>
    %c0_6 = arith.constant 0 : index
    %c0_7 = arith.constant 0 : index
    %8 = vector.load %arg5[%c0_6, %c0_7] : memref<8x32xf32, #tpu.memory_space<vmem>>, vector<8x32xf32>
    tpu.vector_store %arg5[%c0_6, %c0_7], %7 {strides = array<i32>} : memref<8x32xf32, #tpu.memory_space<vmem>>, vector<8x32xf32>,
    return
  }
  func.func @transform_0(%arg0: i32, %arg1: i32) -> (i32, i32) {
    %c0_i32 = arith.constant 0 : i32
    %c0_i32_0 = arith.constant 0 : i32
    return %arg0, %c0_i32 : i32, i32
  }
  func.func @transform_1(%arg0: i32, %arg1: i32) -> (i32, i32) {
    %c0_i32 = arith.constant 0 : i32
    %c0_i32_0 = arith.constant 0 : i32
    return %c0_i32, %arg1 : i32, i32
  }
  func.func @transform_2(%arg0: i32, %arg1: i32) -> (i32, i32) {
    %c0_i32 = arith.constant 0 : i32
    %c0_i32_0 = arith.constant 0 : i32
    return %c0_i32, %arg1 : i32, i32
  }
  func.func @transform_3(%arg0: i32, %arg1: i32) -> (i32, i32) {
    %c0_i32 = arith.constant 0 : i32
    return %arg0, %arg1 : i32, i32
  }
}

</mosaic_0001>

<bundles_post_ra>
// kernel: tpu_custom_call.1
= control target key start
LH: loop header
LB: loop body
LE: loop exit
PB: predicated region body
PF: predicated region fallthrough
CT: control target
= control target key end

     0   :  { %12 = vsyncpa [#allocation3], 0  ;;  %s802_s0 = inlined_call_operand.vmem [shape: f32[8,32], index: 0, kind: input, shape index: {}]   ;;  %s803_s1 = inlined_call_operand.vmem [shape: f32[32,32], index: 1, kind: input, shape index: {}]   ;;  %s804_s2 = inlined_call_operand.vmem [shape: f32[1,32], index: 2, kind: input, shape index: {}]   ;;  %s805_s3 = inlined_call_operand.hbm [shape: f32[32,32], index: 3, kind: input, shape index: {}]   ;;  %s806_s4 = inlined_call_operand.vmem [shape: f32[1,32], index: 4, kind: input, shape index: {}]   ;;  %s807_s5 = inlined_call_operand.vmem [shape: f32[32,16], index: 5, kind: input, shape index: {}]   ;;  %s808_s6 = inlined_call_operand.vmem [shape: f32[1,16], index: 6, kind: input, shape index: {}]   ;;  %s809_s7 = inlined_call_operand.hbm [shape: f32[8,16], index: 7, kind: output, shape index: {}]  }
   0x1   :  { %13 = vsyncpa [#allocation4], 0  ;;  %s24_s26 = sshll.u32 %s805_s3, 4  ;;  %s713_s27 = smov [#allocation2]   ;;  %s25_s26 = int_to_ptr.hbm [resolvable:$true] %s24_s26 }
   0x2   :  { %s26_s28 = sshll.u32 %s713_s27, 4  ;;  %s714_s29 = smov 128   ;;  %s27_s28 = int_to_ptr.vmem [resolvable:$true] %s26_s28 }
   0x3   :  { %s715_s30 = smov 8  }
   0x4   :  { %32 = dma.hbm_to_vmem [thread:$0]  %s25_s26, 512, %s27_s28, [#allocation3], %s714_s29, %s714_s29, %s715_s30  }
   0x5   :  { %709 = dma.done.wait [#allocation3], 512  }
   0x6   :  { %710 = vsyncadd [#allocation3], 4294966784  ;;  %vm54_vm0 = vcmask 261120   ;;  %v50_v0 = vld [vmem:[%s803_s1 + $0x18] sm:$0xff]  ;;  %v49_v1 = vld [vmem:[%s803_s1 + $0x10] sm:$0xff]  ;;  %s716_s26 = smov [#allocation5]  }
   0x7   :  { %v48_v2 = vld [vmem:[%s803_s1 + $0x8] sm:$0xff]  ;;  %v70_v3 = vand.u32 4294901760, %v50_v0  ;;  %v72_v4 = vand.u32 4294901760, %v49_v1  ;;  %v47_v6 = vld [vmem:[%s803_s1] sm:$0xff]  ;;  %v247_v31 = vld [vmem:[#allocation2 + $0x18] sm:$0xff]  ;;  %s642_s27 = sshll.u32 %s716_s26, 4  ;;  %s643_s27 = int_to_ptr.vmem [resolvable:$true] %s642_s27 }
   0x8   :  { %v74_v5 = vand.u32 4294901760, %v48_v2  ;;  %v46_v7 = vld [vmem:[%s802_s0] sm:$0xff]  ;;  %v76_v8 = vand.u32 4294901760, %v47_v6  ;;  %v266_v32 = vand.u32 4294901760, %v247_v31  ;;  %v246_v33 = vld [vmem:[#allocation2 + $0x10] sm:$0xff]  ;;  %v245_v36 = vld [vmem:[#allocation2 + $0x8] sm:$0xff] }
   0x9   :  { %v56_v9 = vsel %vm54_vm0, %v46_v7, 0  ;;  %v100_v10 = vsub.f32 %v50_v0, %v70_v3  ;;  %71 = vmatpush.msra.mxu0 %v70_v3  ;;  %v106_v11 = vsub.f32 %v49_v1, %v72_v4  ;;  %171 = vmatpush.msra.mxu3 %v70_v3  ;;  %v268_v35 = vand.u32 4294901760, %v246_v33  ;;  %v244_v40 = vld [vmem:[#allocation2] sm:$0xff]  ;;  %s644_s30 = sshll.u32 %s809_s7, 4  ;;  %s645_s30 = int_to_ptr.hbm [resolvable:$true] %s644_s30 }
   0xa   :  { %v112_v12 = vsub.f32 %v48_v2, %v74_v5  ;;  %v78_v13 = vand.u32 4294901760, %v56_v9  ;;  %v118_v14 = vsub.f32 %v47_v6, %v76_v8  ;;  %v296_v34 = vsub.f32 %v247_v31, %v266_v32  ;;  %v658_v55 = vld [vmem:[%s804_s2] ss:$0 sm:$0xff] }
   0xb   :  { %142 = vmatpush.msra.mxu2 %v100_v10  ;;  %73 = vmatpush.msra.mxu0 %v72_v4  ;;  %v101_v15 = vand.u32 4294901760, %v100_v10  ;;  %v107_v16 = vand.u32 4294901760, %v106_v11  ;;  %v302_v38 = vsub.f32 %v246_v33, %v268_v35  ;;  %v270_v39 = vand.u32 4294901760, %v245_v36 }
   0xc   :  { %v79_v17 = vsub.f32 %v56_v9, %v78_v13  ;;  %v113_v18 = vand.u32 4294901760, %v112_v12  ;;  %173 = vmatpush.msra.mxu3 %v72_v4  ;;  %v119_v19 = vand.u32 4294901760, %v118_v14  ;;  %v297_v37 = vand.u32 4294901760, %v296_v34 }
   0xd   :  { %145 = vmatpush.msra.mxu2 %v106_v11  ;;  %v102_v20 = vsub.f32 %v100_v10, %v101_v15  ;;  %75 = vmatpush.msra.mxu0 %v74_v5  ;;  %v108_v21 = vsub.f32 %v106_v11, %v107_v16  ;;  %v303_v42 = vand.u32 4294901760, %v302_v38  ;;  %v308_v43 = vsub.f32 %v245_v36, %v270_v39  ;;  %v443_v11 = vld [vmem:[%s807_s5 + $0x18] sm:$0xff] }
   0xe   :  { %v114_v22 = vsub.f32 %v112_v12, %v113_v18  ;;  %v80_v23 = vand.u32 4294901760, %v79_v17  ;;  %175 = vmatpush.msra.mxu3 %v74_v5  ;;  %v120_v27 = vsub.f32 %v118_v14, %v119_v19  ;;  %v298_v41 = vsub.f32 %v296_v34, %v297_v37 }
   0xf   :  { %v103_v24 = vand.u32 4294901760, %v102_v20  ;;  %148 = vmatpush.msra.mxu2 %v112_v12  ;;  %v109_v25 = vand.u32 4294901760, %v108_v21  ;;  %77 = vmatpush.msra.mxu0 %v76_v8  ;;  %v272_v44 = vand.u32 4294901760, %v244_v40  ;;  %v304_v46 = vsub.f32 %v302_v38, %v303_v42  ;;  %v440_v20 = vld [vmem:[%s807_s5] sm:$0xff] }
  0x10   :  { %v81_v26 = vsub.f32 %v79_v17, %v80_v23  ;;  %177 = vmatpush.msra.mxu3 %v76_v8  ;;  %v115_v28 = vand.u32 4294901760, %v114_v22  ;;  %v121_v30 = vand.u32 4294901760, %v120_v27  ;;  %v299_v45 = vand.u32 4294901760, %v298_v41 }
  0x11   :  { %200 = vmatpush.msrb.mxu0 %v101_v15  ;;  %104 = vmatpush.msra.mxu1 %v103_v24  ;;  %v309_v47 = vand.u32 4294901760, %v308_v43  ;;  %v314_v48 = vsub.f32 %v244_v40, %v272_v44  ;;  %v305_v49 = vand.u32 4294901760, %v304_v46  ;;  %v462_v12 = vand.u32 4294901760, %v443_v11 }
  0x12   :  { %151 = vmatpush.msra.mxu2 %v118_v14  ;;  %v82_v29 = vand.u32 4294901760, %v81_v26  ;;  %181 = vmatmul.f32.vlgmr.msra.gmra.mxu3 %v80_v23  ;;  %v468_v24 = vand.u32 4294901760, %v440_v20  ;;  %vm635_vm1 = vcmask 130048  }
  0x13   :  { %154 = vmatmul.f32.vlgmr.msra.gmra.mxu2 %v79_v17  ;;  %110 = vmatpush.msra.mxu1 %v109_v25  ;;  %v310_v50 = vsub.f32 %v308_v43, %v309_v47  ;;  %v315_v51 = vand.u32 4294901760, %v314_v48  ;;  %v492_v14 = vsub.f32 %v443_v11, %v462_v12 }
  0x14   :  { %83 = vmatmul.f32.vlgmr.msra.gmra.mxu0 %v82_v29  ;;  %267 = vmatpush.msrb.mxu2 %v266_v32 }
  0x15   :  { %204 = vmatpush.msrb.mxu0 %v107_v16  ;;  %116 = vmatpush.msra.mxu1 %v115_v28  ;;  %v311_v52 = vand.u32 4294901760, %v310_v50  ;;  %v316_v53 = vsub.f32 %v314_v48, %v315_v51  ;;  %v441_v16 = vld [vmem:[%s807_s5 + $0x8] sm:$0xff]  ;;  %v493_v17 = vand.u32 4294901760, %v492_v14  ;;  %v510_v28 = vsub.f32 %v440_v20, %v468_v24 }
  0x16   :  { %269 = vmatpush.msrb.mxu2 %v268_v35  ;;  %300 = vmatpush.msrb.mxu3 %v299_v45 }
  0x17   :  { %208 = vmatpush.msrb.mxu0 %v113_v18  ;;  %122 = vmatpush.msra.mxu1 %v121_v30  ;;  %v317_v54 = vand.u32 4294901760, %v316_v53  ;;  %v494_v21 = vsub.f32 %v492_v14, %v493_v17  ;;  %v511_v31 = vand.u32 4294901760, %v510_v28 }
  0x18   :  { %124 = vmatmul.f32.vlgmr.msra.gmra.mxu1 %v78_v13  ;;  %271 = vmatpush.msrb.mxu2 %v270_v39 }
  0x19   :  { %212 = vmatpush.msrb.mxu0 %v119_v19  ;;  %231 = vmatpush.msrb.mxu1 %v70_v3  ;;  %v466_v19 = vand.u32 4294901760, %v441_v16  ;;  %v495_v25 = vand.u32 4294901760, %v494_v21  ;;  %v512_v33 = vsub.f32 %v510_v28, %v511_v31 }
  0x1a   :  { %273 = vmatpush.msrb.mxu2 %v272_v44  ;;  %306 = vmatpush.msrb.mxu3 %v305_v49 }
  0x1b   :  { %233 = vmatpush.msrb.mxu1 %v72_v4  ;;  %338 = vmatpush.msra.mxu0 %v296_v34  ;;  %v504_v23 = vsub.f32 %v441_v16, %v466_v19  ;;  %v513_v34 = vand.u32 4294901760, %v512_v33 }
  0x1c   :  { %214 = vmatmul.f32.vlgmr.msrb.gmra.mxu0 %v78_v13  ;;  %396 = vmatpush.msra.mxu2 %v297_v37 }
  0x1d   :  { %235 = vmatpush.msrb.mxu1 %v74_v5  ;;  %341 = vmatpush.msra.mxu0 %v302_v38  ;;  %v505_v27 = vand.u32 4294901760, %v504_v23 }
  0x1e   :  { %400 = vmatpush.msra.mxu2 %v303_v42  ;;  %312 = vmatpush.msrb.mxu3 %v311_v52 }
  0x1f   :  { %237 = vmatpush.msrb.mxu1 %v76_v8  ;;  %344 = vmatpush.msra.mxu0 %v308_v43  ;;  %v506_v30 = vsub.f32 %v504_v23, %v505_v27 }
  0x20   :  { %239 = vmatmul.f32.vlgmr.msrb.gmra.mxu1 %v78_v13  ;;  %404 = vmatpush.msra.mxu2 %v309_v47  ;;  %v442_v13 = vld [vmem:[%s807_s5 + $0x10] sm:$0xff] }
  0x21   :  { %367 = vmatpush.msra.mxu1 %v266_v32  ;;  %347 = vmatpush.msra.mxu0 %v314_v48  ;;  %v464_v15 = vand.u32 4294901760, %v442_v13 }
  0x22   :  { %318 = vmatpush.msrb.mxu3 %v317_v54  ;;  %408 = vmatpush.msra.mxu2 %v315_v51 }
  0x23   :  { %369 = vmatpush.msra.mxu1 %v268_v35  ;;  %463 = vmatpush.msrb.mxu0 %v462_v12  ;;  %v498_v18 = vsub.f32 %v442_v13, %v464_v15 }
  0x24   :  { %427 = vmatpush.msra.mxu3 %v266_v32  ;;  %v507_v32 = vand.u32 4294901760, %v506_v30 }
  0x25   :  { %371 = vmatpush.msra.mxu1 %v270_v39  ;;  %465 = vmatpush.msrb.mxu0 %v464_v15  ;;  %v499_v22 = vand.u32 4294901760, %v498_v18 }
  0x26   :  { %429 = vmatpush.msra.mxu3 %v268_v35  ;;  %v659_v35 = vld [vmem:[%s806_s4] ss:$0 sm:$0xff] }
  0x27   :  { %373 = vmatpush.msra.mxu1 %v272_v44  ;;  %467 = vmatpush.msrb.mxu0 %v466_v19  ;;  %v500_v26 = vsub.f32 %v498_v18, %v499_v22 }
  0x28   :  { %431 = vmatpush.msra.mxu3 %v270_v39 }
  0x29   :  { %469 = vmatpush.msrb.mxu0 %v468_v24  ;;  %496 = vmatpush.msrb.mxu1 %v495_v25  ;;  %v501_v29 = vand.u32 4294901760, %v500_v26 }
  0x2a   :  { %433 = vmatpush.msra.mxu3 %v272_v44 }
  0x2b   :  { %502 = vmatpush.msrb.mxu1 %v501_v29 }
  0x2d   :  { %508 = vmatpush.msrb.mxu1 %v507_v32 }
  0x2f   :  { %514 = vmatpush.msrb.mxu1 %v513_v34 }
  0x91   :  { %v84_v56 = vpop.f32.mrf.mxu0 }
  0x92   :  { %v85_v57 = vadd.f32 %v658_v55, %v84_v56  ;;  %v660_v55 = vld [vmem:[%s808_s6] ss:$0 sm:$0xff] }
  0x95   :  { %v125_v58 = vpop.f32.mrf.mxu1  ;;  %v182_v61 = vpop.f32.mrf.mxu3 }
  0x96   :  { %v155_v59 = vpop.f32.mrf.mxu2  ;;  %v126_v60 = vadd.f32 %v125_v58, %v85_v57 }
  0x98   :  { %v156_v62 = vadd.f32 %v155_v59, %v126_v60 }
  0x99   :  { %v215_v63 = vpop.f32.mrf.mxu0 }
  0x9a   :  { %v183_v0 = vadd.f32 %v182_v61, %v156_v62 }
  0x9c   :  { %v216_v1 = vadd.f32 %v215_v63, %v183_v0 }
  0x9d   :  { %v240_v2 = vpop.f32.mrf.mxu1 }
  0x9e   :  { %v241_v3 = vadd.f32 %v240_v2, %v216_v1 }
  0xa0   :  { %v243_v4 = vmax.f32 %v241_v3, 0.0 }
  0xa2   :  { %v252_v5 = vsel %vm54_vm0, %v243_v4, 0 }
  0xa3   :  { %v274_v6 = vand.u32 4294901760, %v252_v5 }
  0xa5   :  { %v275_v7 = vsub.f32 %v252_v5, %v274_v6  ;;  %320 = vmatmul.f32.vlgmr.msrb.gmra.mxu3 %v274_v6 }
  0xa6   :  { %563 = vmatpush.msrb.mxu3 %v462_v12 }
  0xa7   :  { %350 = vmatmul.f32.vlgmr.msra.gmra.mxu0 %v275_v7  ;;  %v276_v8 = vand.u32 4294901760, %v275_v7 }
  0xa8   :  { %565 = vmatpush.msrb.mxu3 %v464_v15  ;;  %592 = vmatpush.msra.mxu0 %v493_v17 }
  0xa9   :  { %377 = vmatmul.f32.vlgmr.msra.gmra.mxu1 %v276_v8  ;;  %v277_v9 = vsub.f32 %v275_v7, %v276_v8 }
  0xaa   :  { %567 = vmatpush.msrb.mxu3 %v466_v19  ;;  %596 = vmatpush.msra.mxu0 %v499_v22 }
  0xab   :  { %v278_v10 = vand.u32 4294901760, %v277_v9  ;;  %623 = vmatpush.msra.mxu1 %v462_v12 }
  0xac   :  { %569 = vmatpush.msrb.mxu3 %v468_v24  ;;  %600 = vmatpush.msra.mxu0 %v505_v27 }
  0xad   :  { %279 = vmatmul.f32.vlgmr.msrb.gmra.mxu2 %v278_v10  ;;  %435 = vmatmul.f32.vlgmr.msra.gmra.mxu3 %v274_v6 }
  0xae   :  { %534 = vmatpush.msrb.mxu2 %v492_v14  ;;  %604 = vmatpush.msra.mxu0 %v511_v31 }
  0xaf   :  { %625 = vmatpush.msra.mxu1 %v464_v15 }
  0xb0   :  { %537 = vmatpush.msrb.mxu2 %v498_v18 }
  0xb1   :  { %627 = vmatpush.msra.mxu1 %v466_v19 }
  0xb2   :  { %540 = vmatpush.msrb.mxu2 %v504_v23 }
  0xb3   :  { %629 = vmatpush.msra.mxu1 %v468_v24 }
  0xb4   :  { %543 = vmatpush.msrb.mxu2 %v510_v28 }
  0xb5   :  { %410 = vmatmul.f32.vlgmr.msra.gmra.mxu2 %v274_v6 }
 0x124   :  { %v351_v40 = vpop.f32.mrf.mxu0 }
 0x126   :  { %v378_v42 = vpop.f32.mrf.mxu1 }
 0x128   :  { %v321_v36 = vpop.f32.mrf.mxu3 }
 0x130   :  { %v280_v37 = vpop.f32.mrf.mxu2  ;;  %v436_v46 = vpop.f32.mrf.mxu3 }
 0x131   :  { %v281_v38 = vadd.f32 %v659_v35, %v280_v37 }
 0x133   :  { %v322_v39 = vadd.f32 %v321_v36, %v281_v38 }
 0x135   :  { %v352_v41 = vadd.f32 %v351_v40, %v322_v39 }
 0x137   :  { %v379_v43 = vadd.f32 %v378_v42, %v352_v41 }
 0x138   :  { %v411_v44 = vpop.f32.mrf.mxu2 }
 0x139   :  { %v412_v45 = vadd.f32 %v411_v44, %v379_v43 }
 0x13b   :  { %v437_v47 = vadd.f32 %v436_v46, %v412_v45 }
 0x13d   :  { %v439_v48 = vmax.f32 %v437_v47, 0.0 }
 0x13f   :  { %v448_v49 = vsel %vm54_vm0, %v439_v48, 0 }
 0x140   :  { %v470_v50 = vand.u32 4294901760, %v448_v49 }
 0x142   :  { %v471_v51 = vsub.f32 %v448_v49, %v470_v50  ;;  %516 = vmatmul.f32.vlgmr.msrb.gmra.mxu1 %v470_v50 }
 0x144   :  { %546 = vmatmul.f32.vlgmr.msrb.gmra.mxu2 %v471_v51  ;;  %v472_v52 = vand.u32 4294901760, %v471_v51 }
 0x146   :  { %573 = vmatmul.f32.vlgmr.msrb.gmra.mxu3 %v472_v52  ;;  %v473_v53 = vsub.f32 %v471_v51, %v472_v52 }
 0x148   :  { %v474_v54 = vand.u32 4294901760, %v473_v53 }
 0x14a   :  { %475 = vmatmul.f32.vlgmr.msrb.gmra.mxu0 %v474_v54  ;;  %631 = vmatmul.f32.vlgmr.msra.gmra.mxu1 %v470_v50 }
 0x152   :  { %606 = vmatmul.f32.vlgmr.msra.gmra.mxu0 %v470_v50 }
 0x1bf   :  { %v517_v56 = vpop.f32.mrf.mxu1 }
 0x1c7   :  { %v476_v57 = vpop.f32.mrf.mxu0  ;;  %v547_v60 = vpop.f32.mrf.mxu2 }
 0x1c8   :  { %v477_v58 = vadd.f32 %v660_v55, %v476_v57  ;;  %v632_v2 = vpop.f32.mrf.mxu1 }
 0x1c9   :  { %v574_v62 = vpop.f32.mrf.mxu3 }
 0x1ca   :  { %v518_v59 = vadd.f32 %v517_v56, %v477_v58 }
 0x1cc   :  { %v548_v61 = vadd.f32 %v547_v60, %v518_v59 }
 0x1ce   :  { %v575_v63 = vadd.f32 %v574_v62, %v548_v61 }
 0x1cf   :  { %v607_v0 = vpop.f32.mrf.mxu0 }
 0x1d0   :  { %v608_v1 = vadd.f32 %v607_v0, %v575_v63 }
 0x1d2   :  { %v633_v3 = vadd.f32 %v632_v2, %v608_v1 }
 0x1d4   :  { %636 = vst.msk [vmem:[#allocation5] sm:$0xff] %vm635_vm1, %v633_v3 }
 0x1d5   :  { %647 = dma.vmem_to_hbm [thread:$0]  %s643_s27, 128, %s645_s30, [#allocation4]  }
 0x1d6   :  { %711 = dma.done.wait [#allocation4], 128  }
 0x1d7   :  { %712 = vsyncadd [#allocation4], 4294967168 }
 0x1d8   :  { %652 = vsyncpa [#allocation3], 1 }
 0x1d9   :  { %653 = vsyncpa [#allocation4], 1 }

// kernel: tpu_custom_call.1
= control target key start
LH: loop header
LB: loop body
LE: loop exit
PB: predicated region body
PF: predicated region fallthrough
CT: control target
= control target key end

     0   :  { %12 = vsyncpa [#allocation3], 0  ;;  %s802_s0 = inlined_call_operand.vmem [shape: f32[8,32], index: 0, kind: input, shape index: {}]   ;;  %s803_s1 = inlined_call_operand.vmem [shape: f32[32,32], index: 1, kind: input, shape index: {}]   ;;  %s804_s2 = inlined_call_operand.vmem [shape: f32[1,32], index: 2, kind: input, shape index: {}]   ;;  %s805_s3 = inlined_call_operand.hbm [shape: f32[32,32], index: 3, kind: input, shape index: {}]   ;;  %s806_s4 = inlined_call_operand.vmem [shape: f32[1,32], index: 4, kind: input, shape index: {}]   ;;  %s807_s5 = inlined_call_operand.vmem [shape: f32[32,16], index: 5, kind: input, shape index: {}]   ;;  %s808_s6 = inlined_call_operand.vmem [shape: f32[1,16], index: 6, kind: input, shape index: {}]   ;;  %s809_s7 = inlined_call_operand.hbm [shape: f32[8,16], index: 7, kind: output, shape index: {}]  }
   0x1   :  { %13 = vsyncpa [#allocation4], 0  ;;  %s24_s26 = sshll.u32 %s805_s3, 4  ;;  %s713_s27 = smov [#allocation2]   ;;  %s25_s26 = int_to_ptr.hbm [resolvable:$true] %s24_s26 }
   0x2   :  { %s26_s28 = sshll.u32 %s713_s27, 4  ;;  %s714_s29 = smov 128   ;;  %s27_s28 = int_to_ptr.vmem [resolvable:$true] %s26_s28 }
   0x3   :  { %s715_s30 = smov 8  }
   0x4   :  { %32 = dma.hbm_to_vmem [thread:$0]  %s25_s26, 512, %s27_s28, [#allocation3], %s714_s29, %s714_s29, %s715_s30  }
   0x5   :  { %709 = dma.done.wait [#allocation3], 512  }
   0x6   :  { %710 = vsyncadd [#allocation3], 4294966784  ;;  %vm54_vm0 = vcmask 261120   ;;  %v50_v0 = vld [vmem:[%s803_s1 + $0x18] sm:$0xff]  ;;  %v49_v1 = vld [vmem:[%s803_s1 + $0x10] sm:$0xff]  ;;  %s716_s26 = smov [#allocation5]  }
   0x7   :  { %v48_v2 = vld [vmem:[%s803_s1 + $0x8] sm:$0xff]  ;;  %v70_v3 = vand.u32 4294901760, %v50_v0  ;;  %v72_v4 = vand.u32 4294901760, %v49_v1  ;;  %v47_v6 = vld [vmem:[%s803_s1] sm:$0xff]  ;;  %v247_v31 = vld [vmem:[#allocation2 + $0x18] sm:$0xff]  ;;  %s642_s27 = sshll.u32 %s716_s26, 4  ;;  %s643_s27 = int_to_ptr.vmem [resolvable:$true] %s642_s27 }
   0x8   :  { %v74_v5 = vand.u32 4294901760, %v48_v2  ;;  %v46_v7 = vld [vmem:[%s802_s0] sm:$0xff]  ;;  %v76_v8 = vand.u32 4294901760, %v47_v6  ;;  %v266_v32 = vand.u32 4294901760, %v247_v31  ;;  %v246_v33 = vld [vmem:[#allocation2 + $0x10] sm:$0xff]  ;;  %v245_v36 = vld [vmem:[#allocation2 + $0x8] sm:$0xff] }
   0x9   :  { %v56_v9 = vsel %vm54_vm0, %v46_v7, 0  ;;  %v100_v10 = vsub.f32 %v50_v0, %v70_v3  ;;  %71 = vmatpush.msra.mxu0 %v70_v3  ;;  %v106_v11 = vsub.f32 %v49_v1, %v72_v4  ;;  %171 = vmatpush.msra.mxu3 %v70_v3  ;;  %v268_v35 = vand.u32 4294901760, %v246_v33  ;;  %v244_v40 = vld [vmem:[#allocation2] sm:$0xff]  ;;  %s644_s30 = sshll.u32 %s809_s7, 4  ;;  %s645_s30 = int_to_ptr.hbm [resolvable:$true] %s644_s30 }
   0xa   :  { %v112_v12 = vsub.f32 %v48_v2, %v74_v5  ;;  %v78_v13 = vand.u32 4294901760, %v56_v9  ;;  %v118_v14 = vsub.f32 %v47_v6, %v76_v8  ;;  %v296_v34 = vsub.f32 %v247_v31, %v266_v32  ;;  %v658_v55 = vld [vmem:[%s804_s2] ss:$0 sm:$0xff] }
   0xb   :  { %142 = vmatpush.msra.mxu2 %v100_v10  ;;  %73 = vmatpush.msra.mxu0 %v72_v4  ;;  %v101_v15 = vand.u32 4294901760, %v100_v10  ;;  %v107_v16 = vand.u32 4294901760, %v106_v11  ;;  %v302_v38 = vsub.f32 %v246_v33, %v268_v35  ;;  %v270_v39 = vand.u32 4294901760, %v245_v36 }
   0xc   :  { %v79_v17 = vsub.f32 %v56_v9, %v78_v13  ;;  %v113_v18 = vand.u32 4294901760, %v112_v12  ;;  %173 = vmatpush.msra.mxu3 %v72_v4  ;;  %v119_v19 = vand.u32 4294901760, %v118_v14  ;;  %v297_v37 = vand.u32 4294901760, %v296_v34 }
   0xd   :  { %145 = vmatpush.msra.mxu2 %v106_v11  ;;  %v102_v20 = vsub.f32 %v100_v10, %v101_v15  ;;  %75 = vmatpush.msra.mxu0 %v74_v5  ;;  %v108_v21 = vsub.f32 %v106_v11, %v107_v16  ;;  %v303_v42 = vand.u32 4294901760, %v302_v38  ;;  %v308_v43 = vsub.f32 %v245_v36, %v270_v39  ;;  %v443_v11 = vld [vmem:[%s807_s5 + $0x18] sm:$0xff] }
   0xe   :  { %v114_v22 = vsub.f32 %v112_v12, %v113_v18  ;;  %v80_v23 = vand.u32 4294901760, %v79_v17  ;;  %175 = vmatpush.msra.mxu3 %v74_v5  ;;  %v120_v27 = vsub.f32 %v118_v14, %v119_v19  ;;  %v298_v41 = vsub.f32 %v296_v34, %v297_v37 }
   0xf   :  { %v103_v24 = vand.u32 4294901760, %v102_v20  ;;  %148 = vmatpush.msra.mxu2 %v112_v12  ;;  %v109_v25 = vand.u32 4294901760, %v108_v21  ;;  %77 = vmatpush.msra.mxu0 %v76_v8  ;;  %v272_v44 = vand.u32 4294901760, %v244_v40  ;;  %v304_v46 = vsub.f32 %v302_v38, %v303_v42  ;;  %v440_v20 = vld [vmem:[%s807_s5] sm:$0xff] }
  0x10   :  { %v81_v26 = vsub.f32 %v79_v17, %v80_v23  ;;  %177 = vmatpush.msra.mxu3 %v76_v8  ;;  %v115_v28 = vand.u32 4294901760, %v114_v22  ;;  %v121_v30 = vand.u32 4294901760, %v120_v27  ;;  %v299_v45 = vand.u32 4294901760, %v298_v41 }
  0x11   :  { %200 = vmatpush.msrb.mxu0 %v101_v15  ;;  %104 = vmatpush.msra.mxu1 %v103_v24  ;;  %v309_v47 = vand.u32 4294901760, %v308_v43  ;;  %v314_v48 = vsub.f32 %v244_v40, %v272_v44  ;;  %v305_v49 = vand.u32 4294901760, %v304_v46  ;;  %v462_v12 = vand.u32 4294901760, %v443_v11 }
  0x12   :  { %151 = vmatpush.msra.mxu2 %v118_v14  ;;  %v82_v29 = vand.u32 4294901760, %v81_v26  ;;  %181 = vmatmul.f32.vlgmr.msra.gmra.mxu3 %v80_v23  ;;  %v468_v24 = vand.u32 4294901760, %v440_v20  ;;  %vm635_vm1 = vcmask 130048  }
  0x13   :  { %154 = vmatmul.f32.vlgmr.msra.gmra.mxu2 %v79_v17  ;;  %110 = vmatpush.msra.mxu1 %v109_v25  ;;  %v310_v50 = vsub.f32 %v308_v43, %v309_v47  ;;  %v315_v51 = vand.u32 4294901760, %v314_v48  ;;  %v492_v14 = vsub.f32 %v443_v11, %v462_v12 }
  0x14   :  { %83 = vmatmul.f32.vlgmr.msra.gmra.mxu0 %v82_v29  ;;  %267 = vmatpush.msrb.mxu2 %v266_v32 }
  0x15   :  { %204 = vmatpush.msrb.mxu0 %v107_v16  ;;  %116 = vmatpush.msra.mxu1 %v115_v28  ;;  %v311_v52 = vand.u32 4294901760, %v310_v50  ;;  %v316_v53 = vsub.f32 %v314_v48, %v315_v51  ;;  %v441_v16 = vld [vmem:[%s807_s5 + $0x8] sm:$0xff]  ;;  %v493_v17 = vand.u32 4294901760, %v492_v14  ;;  %v510_v28 = vsub.f32 %v440_v20, %v468_v24 }
  0x16   :  { %269 = vmatpush.msrb.mxu2 %v268_v35  ;;  %300 = vmatpush.msrb.mxu3 %v299_v45 }
  0x17   :  { %208 = vmatpush.msrb.mxu0 %v113_v18  ;;  %122 = vmatpush.msra.mxu1 %v121_v30  ;;  %v317_v54 = vand.u32 4294901760, %v316_v53  ;;  %v494_v21 = vsub.f32 %v492_v14, %v493_v17  ;;  %v511_v31 = vand.u32 4294901760, %v510_v28 }
  0x18   :  { %124 = vmatmul.f32.vlgmr.msra.gmra.mxu1 %v78_v13  ;;  %271 = vmatpush.msrb.mxu2 %v270_v39 }
  0x19   :  { %212 = vmatpush.msrb.mxu0 %v119_v19  ;;  %231 = vmatpush.msrb.mxu1 %v70_v3  ;;  %v466_v19 = vand.u32 4294901760, %v441_v16  ;;  %v495_v25 = vand.u32 4294901760, %v494_v21  ;;  %v512_v33 = vsub.f32 %v510_v28, %v511_v31 }
  0x1a   :  { %273 = vmatpush.msrb.mxu2 %v272_v44  ;;  %306 = vmatpush.msrb.mxu3 %v305_v49 }
  0x1b   :  { %233 = vmatpush.msrb.mxu1 %v72_v4  ;;  %338 = vmatpush.msra.mxu0 %v296_v34  ;;  %v504_v23 = vsub.f32 %v441_v16, %v466_v19  ;;  %v513_v34 = vand.u32 4294901760, %v512_v33 }
  0x1c   :  { %214 = vmatmul.f32.vlgmr.msrb.gmra.mxu0 %v78_v13  ;;  %396 = vmatpush.msra.mxu2 %v297_v37 }
  0x1d   :  { %235 = vmatpush.msrb.mxu1 %v74_v5  ;;  %341 = vmatpush.msra.mxu0 %v302_v38  ;;  %v505_v27 = vand.u32 4294901760, %v504_v23 }
  0x1e   :  { %400 = vmatpush.msra.mxu2 %v303_v42  ;;  %312 = vmatpush.msrb.mxu3 %v311_v52 }
  0x1f   :  { %237 = vmatpush.msrb.mxu1 %v76_v8  ;;  %344 = vmatpush.msra.mxu0 %v308_v43  ;;  %v506_v30 = vsub.f32 %v504_v23, %v505_v27 }
  0x20   :  { %239 = vmatmul.f32.vlgmr.msrb.gmra.mxu1 %v78_v13  ;;  %404 = vmatpush.msra.mxu2 %v309_v47  ;;  %v442_v13 = vld [vmem:[%s807_s5 + $0x10] sm:$0xff] }
  0x21   :  { %367 = vmatpush.msra.mxu1 %v266_v32  ;;  %347 = vmatpush.msra.mxu0 %v314_v48  ;;  %v464_v15 = vand.u32 4294901760, %v442_v13 }
  0x22   :  { %318 = vmatpush.msrb.mxu3 %v317_v54  ;;  %408 = vmatpush.msra.mxu2 %v315_v51 }
  0x23   :  { %369 = vmatpush.msra.mxu1 %v268_v35  ;;  %463 = vmatpush.msrb.mxu0 %v462_v12  ;;  %v498_v18 = vsub.f32 %v442_v13, %v464_v15 }
  0x24   :  { %427 = vmatpush.msra.mxu3 %v266_v32  ;;  %v507_v32 = vand.u32 4294901760, %v506_v30 }
  0x25   :  { %371 = vmatpush.msra.mxu1 %v270_v39  ;;  %465 = vmatpush.msrb.mxu0 %v464_v15  ;;  %v499_v22 = vand.u32 4294901760, %v498_v18 }
  0x26   :  { %429 = vmatpush.msra.mxu3 %v268_v35  ;;  %v659_v35 = vld [vmem:[%s806_s4] ss:$0 sm:$0xff] }
  0x27   :  { %373 = vmatpush.msra.mxu1 %v272_v44  ;;  %467 = vmatpush.msrb.mxu0 %v466_v19  ;;  %v500_v26 = vsub.f32 %v498_v18, %v499_v22 }
  0x28   :  { %431 = vmatpush.msra.mxu3 %v270_v39 }
  0x29   :  { %469 = vmatpush.msrb.mxu0 %v468_v24  ;;  %496 = vmatpush.msrb.mxu1 %v495_v25  ;;  %v501_v29 = vand.u32 4294901760, %v500_v26 }
  0x2a   :  { %433 = vmatpush.msra.mxu3 %v272_v44 }
  0x2b   :  { %502 = vmatpush.msrb.mxu1 %v501_v29 }
  0x2d   :  { %508 = vmatpush.msrb.mxu1 %v507_v32 }
  0x2f   :  { %514 = vmatpush.msrb.mxu1 %v513_v34 }
  0x91   :  { %v84_v56 = vpop.f32.mrf.mxu0 }
  0x92   :  { %v85_v57 = vadd.f32 %v658_v55, %v84_v56  ;;  %v660_v55 = vld [vmem:[%s808_s6] ss:$0 sm:$0xff] }
  0x95   :  { %v125_v58 = vpop.f32.mrf.mxu1  ;;  %v182_v61 = vpop.f32.mrf.mxu3 }
  0x96   :  { %v155_v59 = vpop.f32.mrf.mxu2  ;;  %v126_v60 = vadd.f32 %v125_v58, %v85_v57 }
  0x98   :  { %v156_v62 = vadd.f32 %v155_v59, %v126_v60 }
  0x99   :  { %v215_v63 = vpop.f32.mrf.mxu0 }
  0x9a   :  { %v183_v0 = vadd.f32 %v182_v61, %v156_v62 }
  0x9c   :  { %v216_v1 = vadd.f32 %v215_v63, %v183_v0 }
  0x9d   :  { %v240_v2 = vpop.f32.mrf.mxu1 }
  0x9e   :  { %v241_v3 = vadd.f32 %v240_v2, %v216_v1 }
  0xa0   :  { %v243_v4 = vmax.f32 %v241_v3, 0.0 }
  0xa2   :  { %v252_v5 = vsel %vm54_vm0, %v243_v4, 0 }
  0xa3   :  { %v274_v6 = vand.u32 4294901760, %v252_v5 }
  0xa5   :  { %v275_v7 = vsub.f32 %v252_v5, %v274_v6  ;;  %320 = vmatmul.f32.vlgmr.msrb.gmra.mxu3 %v274_v6 }
  0xa6   :  { %563 = vmatpush.msrb.mxu3 %v462_v12 }
  0xa7   :  { %350 = vmatmul.f32.vlgmr.msra.gmra.mxu0 %v275_v7  ;;  %v276_v8 = vand.u32 4294901760, %v275_v7 }
  0xa8   :  { %565 = vmatpush.msrb.mxu3 %v464_v15  ;;  %592 = vmatpush.msra.mxu0 %v493_v17 }
  0xa9   :  { %377 = vmatmul.f32.vlgmr.msra.gmra.mxu1 %v276_v8  ;;  %v277_v9 = vsub.f32 %v275_v7, %v276_v8 }
  0xaa   :  { %567 = vmatpush.msrb.mxu3 %v466_v19  ;;  %596 = vmatpush.msra.mxu0 %v499_v22 }
  0xab   :  { %v278_v10 = vand.u32 4294901760, %v277_v9  ;;  %623 = vmatpush.msra.mxu1 %v462_v12 }
  0xac   :  { %569 = vmatpush.msrb.mxu3 %v468_v24  ;;  %600 = vmatpush.msra.mxu0 %v505_v27 }
  0xad   :  { %279 = vmatmul.f32.vlgmr.msrb.gmra.mxu2 %v278_v10  ;;  %435 = vmatmul.f32.vlgmr.msra.gmra.mxu3 %v274_v6 }
  0xae   :  { %534 = vmatpush.msrb.mxu2 %v492_v14  ;;  %604 = vmatpush.msra.mxu0 %v511_v31 }
  0xaf   :  { %625 = vmatpush.msra.mxu1 %v464_v15 }
  0xb0   :  { %537 = vmatpush.msrb.mxu2 %v498_v18 }
  0xb1   :  { %627 = vmatpush.msra.mxu1 %v466_v19 }
  0xb2   :  { %540 = vmatpush.msrb.mxu2 %v504_v23 }
  0xb3   :  { %629 = vmatpush.msra.mxu1 %v468_v24 }
  0xb4   :  { %543 = vmatpush.msrb.mxu2 %v510_v28 }
  0xb5   :  { %410 = vmatmul.f32.vlgmr.msra.gmra.mxu2 %v274_v6 }
 0x124   :  { %v351_v40 = vpop.f32.mrf.mxu0 }
 0x126   :  { %v378_v42 = vpop.f32.mrf.mxu1 }
 0x128   :  { %v321_v36 = vpop.f32.mrf.mxu3 }
 0x130   :  { %v280_v37 = vpop.f32.mrf.mxu2  ;;  %v436_v46 = vpop.f32.mrf.mxu3 }
 0x131   :  { %v281_v38 = vadd.f32 %v659_v35, %v280_v37 }
 0x133   :  { %v322_v39 = vadd.f32 %v321_v36, %v281_v38 }
 0x135   :  { %v352_v41 = vadd.f32 %v351_v40, %v322_v39 }
 0x137   :  { %v379_v43 = vadd.f32 %v378_v42, %v352_v41 }
 0x138   :  { %v411_v44 = vpop.f32.mrf.mxu2 }
 0x139   :  { %v412_v45 = vadd.f32 %v411_v44, %v379_v43 }
 0x13b   :  { %v437_v47 = vadd.f32 %v436_v46, %v412_v45 }
 0x13d   :  { %v439_v48 = vmax.f32 %v437_v47, 0.0 }
 0x13f   :  { %v448_v49 = vsel %vm54_vm0, %v439_v48, 0 }
 0x140   :  { %v470_v50 = vand.u32 4294901760, %v448_v49 }
 0x142   :  { %v471_v51 = vsub.f32 %v448_v49, %v470_v50  ;;  %516 = vmatmul.f32.vlgmr.msrb.gmra.mxu1 %v470_v50 }
 0x144   :  { %546 = vmatmul.f32.vlgmr.msrb.gmra.mxu2 %v471_v51  ;;  %v472_v52 = vand.u32 4294901760, %v471_v51 }
 0x146   :  { %573 = vmatmul.f32.vlgmr.msrb.gmra.mxu3 %v472_v52  ;;  %v473_v53 = vsub.f32 %v471_v51, %v472_v52 }
 0x148   :  { %v474_v54 = vand.u32 4294901760, %v473_v53 }
 0x14a   :  { %475 = vmatmul.f32.vlgmr.msrb.gmra.mxu0 %v474_v54  ;;  %631 = vmatmul.f32.vlgmr.msra.gmra.mxu1 %v470_v50 }
 0x152   :  { %606 = vmatmul.f32.vlgmr.msra.gmra.mxu0 %v470_v50 }
 0x1bf   :  { %v517_v56 = vpop.f32.mrf.mxu1 }
 0x1c7   :  { %v476_v57 = vpop.f32.mrf.mxu0  ;;  %v547_v60 = vpop.f32.mrf.mxu2 }
 0x1c8   :  { %v477_v58 = vadd.f32 %v660_v55, %v476_v57  ;;  %v632_v2 = vpop.f32.mrf.mxu1 }
 0x1c9   :  { %v574_v62 = vpop.f32.mrf.mxu3 }
 0x1ca   :  { %v518_v59 = vadd.f32 %v517_v56, %v477_v58 }
 0x1cc   :  { %v548_v61 = vadd.f32 %v547_v60, %v518_v59 }
 0x1ce   :  { %v575_v63 = vadd.f32 %v574_v62, %v548_v61 }
 0x1cf   :  { %v607_v0 = vpop.f32.mrf.mxu0 }
 0x1d0   :  { %v608_v1 = vadd.f32 %v607_v0, %v575_v63 }
 0x1d2   :  { %v633_v3 = vadd.f32 %v632_v2, %v608_v1 }
 0x1d4   :  { %636 = vst.msk [vmem:[#allocation5] sm:$0xff] %vm635_vm1, %v633_v3 }
 0x1d5   :  { %647 = dma.vmem_to_hbm [thread:$0]  %s643_s27, 128, %s645_s30, [#allocation4]  }
 0x1d6   :  { %711 = dma.done.wait [#allocation4], 128  }
 0x1d7   :  { %712 = vsyncadd [#allocation4], 4294967168 }
 0x1d8   :  { %652 = vsyncpa [#allocation3], 1 }
 0x1d9   :  { %653 = vsyncpa [#allocation4], 1 }

// kernel: tpu_custom_call.1
= control target key start
LH: loop header
LB: loop body
LE: loop exit
PB: predicated region body
PF: predicated region fallthrough
CT: control target
= control target key end

     0   :  { %8 = vsyncpa [#allocation3], 0  ;;  %s386_s0 = inlined_call_operand.hbm [shape: f32[8,32], index: 0, kind: input, shape index: {}]   ;;  %s387_s1 = inlined_call_operand.hbm [shape: f32[32,32], index: 1, kind: input, shape index: {}]   ;;  %s388_s2 = inlined_call_operand.vmem [shape: f32[1,32], index: 2, kind: input, shape index: {}]   ;;  %s389_s3 = inlined_call_operand.hbm [shape: f32[8,32], index: 3, kind: output, shape index: {}]  }
   0x1   :  { %9 = vsyncpa [#allocation6], 0 }
   0x2   :  { %10 = vsyncpa [#allocation4], 0  ;;  %s16_s14 = sshll.u32 %s386_s0, 4  ;;  %s347_s15 = smov [#allocation2]   ;;  %s17_s14 = int_to_ptr.hbm [resolvable:$true] %s16_s14 }
   0x3   :  { %s18_s16 = sshll.u32 %s347_s15, 4  ;;  %s26_s19 = sshll.u32 %s387_s1, 4  ;;  %s19_s16 = int_to_ptr.vmem [resolvable:$true] %s18_s16  ;;  %s27_s19 = int_to_ptr.hbm [resolvable:$true] %s26_s19 }
   0x4   :  { %21 = dma.hbm_to_vmem [thread:$0]  %s17_s14, 128, %s19_s16, [#allocation3]  }
   0x5   :  { %s348_s20 = smov [#allocation5]   ;;  %s349_s22 = smov 128  }
   0x6   :  { %s28_s21 = sshll.u32 %s348_s20, 4  ;;  %s350_s23 = smov 8   ;;  %s29_s21 = int_to_ptr.vmem [resolvable:$true] %s28_s21 }
   0x7   :  { %34 = dma.hbm_to_vmem [thread:$0]  %s27_s19, 512, %s29_s21, [#allocation6], %s349_s22, %s349_s22, %s350_s23  }
   0x8   :  { %341 = dma.done.wait [#allocation3], 128  }
   0x9   :  { %342 = vsyncadd [#allocation3], 4294967168 }
   0xa   :  { %343 = dma.done.wait [#allocation6], 512  }
   0xb   :  { %344 = vsyncadd [#allocation6], 4294966784  ;;  %vm54_vm0 = vcmask 261120   ;;  %v49_v0 = vld [vmem:[#allocation5 + $0x18] sm:$0xff]  ;;  %v48_v1 = vld [vmem:[#allocation5 + $0x10] sm:$0xff]  ;;  %s351_s24 = smov [#allocation7]  }
   0xc   :  { %v47_v2 = vld [vmem:[#allocation5 + $0x8] sm:$0xff]  ;;  %v70_v3 = vand.u32 4294901760, %v49_v0  ;;  %v72_v4 = vand.u32 4294901760, %v48_v1  ;;  %v46_v6 = vld [vmem:[#allocation5] sm:$0xff]  ;;  %v45_v7 = vld [vmem:[#allocation2] sm:$0xff]  ;;  %s250_s25 = sshll.u32 %s351_s24, 4  ;;  %s251_s25 = int_to_ptr.vmem [resolvable:$true] %s250_s25 }
   0xd   :  { %v74_v5 = vand.u32 4294901760, %v47_v2  ;;  %v76_v8 = vand.u32 4294901760, %v46_v6  ;;  %v56_v9 = vsel %vm54_vm0, %v45_v7, 0  ;;  %v268_v31 = vld [vmem:[%s388_s2] ss:$0 sm:$0xff]  ;;  %s252_s28 = sshll.u32 %s389_s3, 4  ;;  %s253_s28 = int_to_ptr.hbm [resolvable:$true] %s252_s28 }
   0xe   :  { %v100_v10 = vsub.f32 %v49_v0, %v70_v3  ;;  %71 = vmatpush.msra.mxu0 %v70_v3  ;;  %v106_v11 = vsub.f32 %v48_v1, %v72_v4  ;;  %171 = vmatpush.msra.mxu3 %v70_v3  ;;  %v78_v13 = vand.u32 4294901760, %v56_v9 }
   0xf   :  { %v112_v12 = vsub.f32 %v47_v2, %v74_v5  ;;  %v118_v14 = vsub.f32 %v46_v6, %v76_v8 }
  0x10   :  { %142 = vmatpush.msra.mxu2 %v100_v10  ;;  %73 = vmatpush.msra.mxu0 %v72_v4  ;;  %v101_v15 = vand.u32 4294901760, %v100_v10  ;;  %v107_v16 = vand.u32 4294901760, %v106_v11  ;;  %v79_v17 = vsub.f32 %v56_v9, %v78_v13 }
  0x11   :  { %v113_v18 = vand.u32 4294901760, %v112_v12  ;;  %173 = vmatpush.msra.mxu3 %v72_v4  ;;  %v119_v19 = vand.u32 4294901760, %v118_v14 }
  0x12   :  { %145 = vmatpush.msra.mxu2 %v106_v11  ;;  %v102_v20 = vsub.f32 %v100_v10, %v101_v15  ;;  %75 = vmatpush.msra.mxu0 %v74_v5  ;;  %v108_v21 = vsub.f32 %v106_v11, %v107_v16  ;;  %v80_v23 = vand.u32 4294901760, %v79_v17 }
  0x13   :  { %v114_v22 = vsub.f32 %v112_v12, %v113_v18  ;;  %175 = vmatpush.msra.mxu3 %v74_v5  ;;  %v120_v27 = vsub.f32 %v118_v14, %v119_v19 }
  0x14   :  { %v103_v24 = vand.u32 4294901760, %v102_v20  ;;  %148 = vmatpush.msra.mxu2 %v112_v12  ;;  %v109_v25 = vand.u32 4294901760, %v108_v21  ;;  %77 = vmatpush.msra.mxu0 %v76_v8  ;;  %v81_v26 = vsub.f32 %v79_v17, %v80_v23 }
  0x15   :  { %177 = vmatpush.msra.mxu3 %v76_v8  ;;  %v115_v28 = vand.u32 4294901760, %v114_v22  ;;  %v121_v30 = vand.u32 4294901760, %v120_v27 }
  0x16   :  { %200 = vmatpush.msrb.mxu0 %v101_v15  ;;  %104 = vmatpush.msra.mxu1 %v103_v24  ;;  %v82_v29 = vand.u32 4294901760, %v81_v26 }
  0x17   :  { %151 = vmatpush.msra.mxu2 %v118_v14  ;;  %181 = vmatmul.f32.vlgmr.msra.gmra.mxu3 %v80_v23 }
  0x18   :  { %154 = vmatmul.f32.vlgmr.msra.gmra.mxu2 %v79_v17  ;;  %110 = vmatpush.msra.mxu1 %v109_v25 }
  0x19   :  { %83 = vmatmul.f32.vlgmr.msra.gmra.mxu0 %v82_v29 }
  0x1a   :  { %204 = vmatpush.msrb.mxu0 %v107_v16  ;;  %116 = vmatpush.msra.mxu1 %v115_v28 }
  0x1c   :  { %208 = vmatpush.msrb.mxu0 %v113_v18  ;;  %122 = vmatpush.msra.mxu1 %v121_v30 }
  0x1d   :  { %124 = vmatmul.f32.vlgmr.msra.gmra.mxu1 %v78_v13 }
  0x1e   :  { %212 = vmatpush.msrb.mxu0 %v119_v19  ;;  %231 = vmatpush.msrb.mxu1 %v70_v3 }
  0x20   :  { %233 = vmatpush.msrb.mxu1 %v72_v4 }
  0x21   :  { %214 = vmatmul.f32.vlgmr.msrb.gmra.mxu0 %v78_v13 }
  0x22   :  { %235 = vmatpush.msrb.mxu1 %v74_v5 }
  0x24   :  { %237 = vmatpush.msrb.mxu1 %v76_v8 }
  0x25   :  { %239 = vmatmul.f32.vlgmr.msrb.gmra.mxu1 %v78_v13 }
  0x96   :  { %v84_v32 = vpop.f32.mrf.mxu0 }
  0x97   :  { %v85_v33 = vadd.f32 %v268_v31, %v84_v32 }
  0x9a   :  { %v125_v34 = vpop.f32.mrf.mxu1  ;;  %v182_v37 = vpop.f32.mrf.mxu3 }
  0x9b   :  { %v155_v35 = vpop.f32.mrf.mxu2  ;;  %v126_v36 = vadd.f32 %v125_v34, %v85_v33 }
  0x9d   :  { %v156_v38 = vadd.f32 %v155_v35, %v126_v36 }
  0x9e   :  { %v215_v39 = vpop.f32.mrf.mxu0 }
  0x9f   :  { %v183_v40 = vadd.f32 %v182_v37, %v156_v38 }
  0xa1   :  { %v216_v41 = vadd.f32 %v215_v39, %v183_v40 }
  0xa2   :  { %v240_v42 = vpop.f32.mrf.mxu1 }
  0xa3   :  { %v241_v43 = vadd.f32 %v240_v42, %v216_v41 }
  0xa5   :  { %v243_v44 = vmax.f32 %v241_v43, 0.0 }
  0xa7   :  { %244 = vst.msk [vmem:[#allocation7] sm:$0xff] %vm54_vm0, %v243_v44 }
  0xa8   :  { %255 = dma.vmem_to_hbm [thread:$0]  %s251_s25, 128, %s253_s28, [#allocation4]  }
  0xa9   :  { %345 = dma.done.wait [#allocation4], 128  }
  0xaa   :  { %346 = vsyncadd [#allocation4], 4294967168 }
  0xab   :  { %260 = vsyncpa [#allocation3], 1 }
  0xac   :  { %261 = vsyncpa [#allocation6], 1 }
  0xad   :  { %262 = vsyncpa [#allocation4], 1 }

</bundles_post_ra>
